<compile_context>
chip_gen: v7x
topology: tpu7x:2x2x1
jax: 0.10.0
libtpu: 0.0.40
codegen_flags: <defaults>
</compile_context>

<pallas_src>
import functools

import jax
import jax.numpy as jnp
from jax.experimental import pallas as pl
from jax.experimental.pallas import tpu as pltpu


def _round_up(a, b):
    return ((a + b - 1) // b) * b


def s6_kernel(x_ref, w1_ref, b1_ref, w23_ref, b23_ref, y_ref, *, n_state):
    # x_ref: (TM, Dp) rows of the fused (batch*seq) axis, feature dim padded to Dp.
    xb = x_ref[...]                                                      # (TM, Dp)

    # delta = softplus(fc1(x)); weight is pre-transposed to (Dp, Dp) -> no .T here.
    z = jnp.dot(xb, w1_ref[...], preferred_element_type=jnp.float32) + b1_ref[...]
    delta = jnp.maximum(z, 0.0) + jnp.log(1.0 + jnp.exp(-jnp.abs(z)))    # stable softplus

    # fc2 and fc3 fused into one (Dp, 2N) GEMM: bc = [B | C]  (lane-dense, 2N=128 here).
    bc = jnp.dot(xb, w23_ref[...], preferred_element_type=jnp.float32) + b23_ref[...]
    s = jnp.sum(bc[:, :n_state] * bc[:, n_state:], axis=-1, keepdims=True)  # (TM, 1)

    # y[m, d] = x[m, d] * delta[m, d] * sum_n B[m, n] * C[m, n]
    # (exact collapse of  y = einsum('ln,ldn->ld', C, x[:, :, None] * delta[:, :, None] * B[:, None, :])
    #  with the dA * h0 term dropped because h0 == 0 and dA is finite.)
    y_ref[...] = (xb * delta * s).astype(y_ref.dtype)


def s6_forward(x, w1, b1, w2, b2, w3, b3, a_log):
    # a_log enters the module's forward only through exp(delta*A) * h with h == 0,
    # so it contributes exactly nothing to y; it is intentionally not sent to the kernel.
    del a_log
    Bsz, L, D = x.shape
    N = w2.shape[0]
    f32 = jnp.float32

    # ---- host-side layout prep (cheap, one-off) --------------------------------
    LANE = 128
    Dp = _round_up(D, LANE)                    # lane-dense loads and stores
    M = Bsz * L                                # fused batch*seq rows
    TM = 256 if M >= 256 else _round_up(M, 8)  # MXU-friendly row tile (mult. of 8/256)
    M_pad = _round_up(M, TM)

    x2d = jnp.zeros((M_pad, Dp), f32).at[:M, :D].set(x.reshape(M, D).astype(f32))

    # Pre-transposed weights: contraction dim (d_model) leading -> no in-kernel transpose.
    w1t = jnp.zeros((Dp, Dp), f32).at[:D, :D].set(w1.T.astype(f32))
    b1r = jnp.zeros((1, Dp), f32).at[0, :D].set(b1.astype(f32))
    # fc2 / fc3 fused into a single (Dp, 2N) weight -> one MXU call instead of two.
    w23t = jnp.zeros((Dp, 2 * N), f32).at[:D, :].set(
        jnp.concatenate([w2.T, w3.T], axis=1).astype(f32))
    b23r = jnp.concatenate([b2, b3]).astype(f32).reshape(1, 2 * N)

    const2d = lambda i: (0, 0)

    y_pad = pl.pallas_call(
        functools.partial(s6_kernel, n_state=N),
        out_shape=jax.ShapeDtypeStruct((M_pad, Dp), f32),
        grid_spec=pltpu.PrefetchScalarGridSpec(
            num_scalar_prefetch=0,
            grid=(M_pad // TM,),
            in_specs=[
                pl.BlockSpec((TM, Dp), lambda i: (i, 0)),   # x rows (tiled over M)
                pl.BlockSpec((Dp, Dp), const2d),            # fc1 weight  (VMEM-resident)
                pl.BlockSpec((1, Dp), const2d),             # fc1 bias
                pl.BlockSpec((Dp, 2 * N), const2d),         # fused fc2|fc3 weight
                pl.BlockSpec((1, 2 * N), const2d),          # fused fc2|fc3 bias
            ],
            out_specs=pl.BlockSpec((TM, Dp), lambda i: (i, 0)),
        ),
        compiler_params=pltpu.CompilerParams(
            dimension_semantics=("parallel",)),             # megacore sharding on v7x
    )(x2d, w1t, b1r, w23t, b23r)

    return y_pad[:M, :D].reshape(Bsz, L, D)


def s6_reference(x, w1, b1, w2, b2, w3, b3, a_log):
    # Pure-JAX reference mirroring the PyTorch S6.forward literally.
    hp = jax.lax.Precision.HIGHEST
    delta = jax.nn.softplus(jnp.einsum('bld,ed->ble', x, w1, precision=hp) + b1)
    Bm = jnp.einsum('bld,nd->bln', x, w2, precision=hp) + b2
    Cm = jnp.einsum('bld,nd->bln', x, w3, precision=hp) + b3
    A = -jnp.exp(a_log)
    dA = jnp.exp(jnp.einsum('bld,dn->bldn', delta, A))
    dB = jnp.einsum('bld,bln->bldn', delta, Bm)
    h = dA * jnp.zeros_like(dA) + x[..., None] * dB
    y = jnp.einsum('bln,bldn->bld', Cm, h, precision=hp)
    return y


if __name__ == "__main__":
    # Small shapes consistent with the module: d_model=16, state_size=64.
    batch, seq_len, d_model, state_size = 2, 8, 16, 64

    key = jax.random.PRNGKey(0)
    kx, k1, k2, k3, kb1, kb2, kb3 = jax.random.split(key, 7)

    x = jax.random.normal(kx, (batch, seq_len, d_model), dtype=jnp.float32)

    # nn.Linear layout: weight is (out_features, in_features).
    lim = 1.0 / (d_model ** 0.5)
    w1 = jax.random.uniform(k1, (d_model, d_model), minval=-lim, maxval=lim, dtype=jnp.float32)
    b1 = jax.random.uniform(kb1, (d_model,), minval=-lim, maxval=lim, dtype=jnp.float32)
    w2 = jax.random.uniform(k2, (state_size, d_model), minval=-lim, maxval=lim, dtype=jnp.float32)
    b2 = jax.random.uniform(kb2, (state_size,), minval=-lim, maxval=lim, dtype=jnp.float32)
    w3 = jax.random.uniform(k3, (state_size, d_model), minval=-lim, maxval=lim, dtype=jnp.float32)
    b3 = jax.random.uniform(kb3, (state_size,), minval=-lim, maxval=lim, dtype=jnp.float32)

    # A_log = log(repeat(arange(1, N+1), 'n -> d n'))
    a_log = jnp.log(
        jnp.broadcast_to(jnp.arange(1, state_size + 1, dtype=jnp.float32),
                         (d_model, state_size)))

    y = s6_forward(x, w1, b1, w2, b2, w3, b3, a_log)
    y = jax.block_until_ready(y)

    y_ref = s6_reference(x, w1, b1, w2, b2, w3, b3, a_log)
    assert y.shape == (batch, seq_len, d_model)
    assert jnp.allclose(y, y_ref, atol=1e-4, rtol=1e-4), "mismatch vs JAX reference"

    print("KERNEL_OK")
</pallas_src>

<mosaic_0001>
module attributes {stable_mosaic.version = 11 : i64} {
  func.func @s6_kernel(%arg0: i32, %arg1: memref<16x128xf32, #tpu.memory_space<vmem>>, %arg2: memref<128x128xf32, #tpu.memory_space<vmem>>, %arg3: memref<1x128xf32, #tpu.memory_space<vmem>>, %arg4: memref<128x128xf32, #tpu.memory_space<vmem>>, %arg5: memref<1x128xf32, #tpu.memory_space<vmem>>, %arg6: memref<16x128xf32, #tpu.memory_space<vmem>>) attributes {dimension_semantics = [#tpu.dimension_semantics<parallel>], iteration_bounds = array<i64: 1>, scalar_prefetch = 0 : i64, scratch_operands = 0 : i64, tpu.core_type = #tpu.core_type<tc>, window_params = [{transform_indices = @transform_0, window_bounds = array<i64: 16, 128>}, {pipeline_mode = #tpu.pipeline_mode<synchronous>, transform_indices = @transform_1, window_bounds = array<i64: 128, 128>}, {pipeline_mode = #tpu.pipeline_mode<synchronous>, transform_indices = @transform_2, window_bounds = array<i64: 1, 128>}, {pipeline_mode = #tpu.pipeline_mode<synchronous>, transform_indices = @transform_3, window_bounds = array<i64: 128, 128>}, {pipeline_mode = #tpu.pipeline_mode<synchronous>, transform_indices = @transform_4, window_bounds = array<i64: 1, 128>}, {transform_indices = @transform_5, window_bounds = array<i64: 16, 128>}]} {
    %c0 = arith.constant 0 : index
    %c0_0 = arith.constant 0 : index
    %0 = vector.load %arg1[%c0, %c0_0] : memref<16x128xf32, #tpu.memory_space<vmem>>, vector<16x128xf32>
    %c0_1 = arith.constant 0 : index
    %c0_2 = arith.constant 0 : index
    %1 = vector.load %arg2[%c0_1, %c0_2] : memref<128x128xf32, #tpu.memory_space<vmem>>, vector<128x128xf32>
    %cst = arith.constant dense<0.000000e+00> : vector<16x128xf32>
    %2 = tpu.matmul %0, %1, %cst {dimension_numbers = #tpu.dot_dimension_numbers<[1], [0], [0], [1], [0, 0, 1, 1], [], []>} : vector<16x128xf32>, vector<128x128xf32>, vector<16x128xf32> -> vector<16x128xf32>
    %c0_3 = arith.constant 0 : index
    %c0_4 = arith.constant 0 : index
    %3 = vector.load %arg3[%c0_3, %c0_4] : memref<1x128xf32, #tpu.memory_space<vmem>>, vector<1x128xf32>
    %4 = vector.broadcast %3 : vector<1x128xf32> to vector<16x128xf32>
    %5 = arith.addf %2, %4 : vector<16x128xf32>
    %cst_5 = arith.constant 0.000000e+00 : f32
    %6 = vector.broadcast %cst_5 : f32 to vector<16x128xf32>
    %7 = arith.maximumf %5, %6 : vector<16x128xf32>
    %8 = math.absf %5 : vector<16x128xf32>
    %cst_6 = arith.constant 0.000000e+00 : f32
    %9 = vector.broadcast %cst_6 : f32 to vector<16x128xf32>
    %10 = arith.subf %9, %8 : vector<16x128xf32>
    %11 = math.exp %10 : vector<16x128xf32>
    %cst_7 = arith.constant 1.000000e+00 : f32
    %12 = vector.broadcast %cst_7 : f32 to vector<16x128xf32>
    %13 = arith.addf %12, %11 : vector<16x128xf32>
    %14 = math.log %13 : vector<16x128xf32>
    %15 = arith.addf %7, %14 : vector<16x128xf32>
    %c0_8 = arith.constant 0 : index
    %c0_9 = arith.constant 0 : index
    %16 = vector.load %arg4[%c0_8, %c0_9] : memref<128x128xf32, #tpu.memory_space<vmem>>, vector<128x128xf32>
    %cst_10 = arith.constant dense<0.000000e+00> : vector<16x128xf32>
    %17 = tpu.matmul %0, %16, %cst_10 {dimension_numbers = #tpu.dot_dimension_numbers<[1], [0], [0], [1], [0, 0, 1, 1], [], []>} : vector<16x128xf32>, vector<128x128xf32>, vector<16x128xf32> -> vector<16x128xf32>
    %c0_11 = arith.constant 0 : index
    %c0_12 = arith.constant 0 : index
    %18 = vector.load %arg5[%c0_11, %c0_12] : memref<1x128xf32, #tpu.memory_space<vmem>>, vector<1x128xf32>
    %19 = vector.broadcast %18 : vector<1x128xf32> to vector<16x128xf32>
    %20 = arith.addf %17, %19 : vector<16x128xf32>
    %21 = vector.extract_strided_slice %20 {offsets = [0, 0], sizes = [16, 64], strides = [1, 1]} : vector<16x128xf32> to vector<16x64xf32>
    %22 = vector.extract_strided_slice %20 {offsets = [0, 64], sizes = [16, 64], strides = [1, 1]} : vector<16x128xf32> to vector<16x64xf32>
    %23 = arith.mulf %21, %22 : vector<16x64xf32>
    %cst_13 = arith.constant dense<0.000000e+00> : vector<16xf32>
    %24 = vector.multi_reduction <add>, %23, %cst_13 [1] : vector<16x64xf32> to vector<16xf32>
    %25 = vector.shape_cast %24 : vector<16xf32> to vector<16x1xf32>
    %26 = arith.mulf %0, %15 : vector<16x128xf32>
    %27 = vector.broadcast %25 : vector<16x1xf32> to vector<16x128xf32>
    %28 = arith.mulf %26, %27 : vector<16x128xf32>
    %c0_14 = arith.constant 0 : index
    %c0_15 = arith.constant 0 : index
    %29 = vector.load %arg6[%c0_14, %c0_15] : memref<16x128xf32, #tpu.memory_space<vmem>>, vector<16x128xf32>
    tpu.vector_store %arg6[%c0_14, %c0_15], %28 {strides = array<i32>} : memref<16x128xf32, #tpu.memory_space<vmem>>, vector<16x128xf32>,
    return
  }
  func.func @transform_0(%arg0: i32) -> (i32, i32) {
    %c0_i32 = arith.constant 0 : i32
    %c0_i32_0 = arith.constant 0 : i32
    return %arg0, %c0_i32 : i32, i32
  }
  func.func @transform_1(%arg0: i32) -> (i32, i32) {
    %c0_i32 = arith.constant 0 : i32
    %c0_i32_0 = arith.constant 0 : i32
    %c0_i32_1 = arith.constant 0 : i32
    return %c0_i32, %c0_i32_0 : i32, i32
  }
  func.func @transform_2(%arg0: i32) -> (i32, i32) {
    %c0_i32 = arith.constant 0 : i32
    %c0_i32_0 = arith.constant 0 : i32
    %c0_i32_1 = arith.constant 0 : i32
    return %c0_i32, %c0_i32_0 : i32, i32
  }
  func.func @transform_3(%arg0: i32) -> (i32, i32) {
    %c0_i32 = arith.constant 0 : i32
    %c0_i32_0 = arith.constant 0 : i32
    %c0_i32_1 = arith.constant 0 : i32
    return %c0_i32, %c0_i32_0 : i32, i32
  }
  func.func @transform_4(%arg0: i32) -> (i32, i32) {
    %c0_i32 = arith.constant 0 : i32
    %c0_i32_0 = arith.constant 0 : i32
    %c0_i32_1 = arith.constant 0 : i32
    return %c0_i32, %c0_i32_0 : i32, i32
  }
  func.func @transform_5(%arg0: i32) -> (i32, i32) {
    %c0_i32 = arith.constant 0 : i32
    %c0_i32_0 = arith.constant 0 : i32
    return %arg0, %c0_i32 : i32, i32
  }
}

</mosaic_0001>

<bundles_post_ra>
// kernel: tpu_custom_call.1
= control target key start
LH: loop header
LB: loop body
LE: loop exit
PB: predicated region body
PF: predicated region fallthrough
CT: control target
= control target key end

     0   :  { %10 = vsyncpa [#allocation3], 0  ;;  %s715_s0 = inlined_call_operand.hbm [shape: f32[16,128], index: 0, kind: input, shape index: {}]   ;;  %s716_s1 = inlined_call_operand.hbm [shape: f32[128,128], index: 1, kind: input, shape index: {}]   ;;  %s717_s2 = inlined_call_operand.vmem [shape: f32[1,128], index: 2, kind: input, shape index: {}]   ;;  %s718_s3 = inlined_call_operand.hbm [shape: f32[128,128], index: 3, kind: input, shape index: {}]   ;;  %s719_s4 = inlined_call_operand.vmem [shape: f32[1,128], index: 4, kind: input, shape index: {}]   ;;  %s720_s5 = inlined_call_operand.hbm [shape: f32[16,128], index: 5, kind: output, shape index: {}]  }
   0x1   :  { %11 = vsyncpa [#allocation6], 0 }
   0x2   :  { %12 = vsyncpa [#allocation4], 0  ;;  %s600_s18 = smov [#allocation5]   ;;  %s601_s20 = smov [#allocation2]  }
   0x3   :  { %s30_s19 = sshll.u32 %s600_s18, 4  ;;  %s18_s21 = sshll.u32 %s601_s20, 4  ;;  %s31_s19 = int_to_ptr.vmem [resolvable:$true] %s30_s19  ;;  %s637_s21 = int_to_ptr.vmem [resolvable:$true] %s18_s21 }
   0x4   :  { %s506_s24 = scalar_lea.hbm %s716_s1, 2048 }
   0x5   :  { %p507_p0 = scmp.ne.s32.totalorder %s716_s1, %s506_s24  ;;  %p510_p1 = scmp.lt.u32.totalorder %s506_s24, %s716_s1 }
   0x7   :  { %p512_p2 = pnand %p510_p1, %p507_p0 }
   0x9   :  { %515 = shalt.err (!%p512_p2)
}
   0xa   :  { %s516_s29 = scalar_lea.vmem %s31_s19, 2048  ;;  %p521_p4 = scmp.lt.s32.totalorder %s31_s19, %s31_s19 }
   0xb   :  { %p517_p3 = scmp.ne.s32.totalorder %s31_s19, %s516_s29  ;;  %p522_p5 = scmp.lt.s32.totalorder %s516_s29, %s516_s29 }
   0xd   :  { %p523_p6 = por %p522_p5, %p521_p4 }
   0xf   :  { %p524_p7 = pnand %p523_p6, %p517_p3 }
  0x11   :  { %527 = shalt.err (!%p524_p7)
}
  0x12   :  { %s602_s30 = smov 128   ;;  %s603_s6 = smov 8  }
  0x13   :  { %36 = dma.hbm_to_vmem [thread:$0]  %s716_s1, 2048, %s31_s19, [#allocation6], %s602_s30, %s602_s30, %s603_s6  }
  0x14   :  { %s528_s11 = scalar_lea.hbm %s715_s0, 256 }
  0x15   :  { %p529_p8 = scmp.ne.s32.totalorder %s715_s0, %s528_s11  ;;  %p532_p9 = scmp.lt.u32.totalorder %s528_s11, %s715_s0 }
  0x17   :  { %p534_p10 = pnand %p532_p9, %p529_p8 }
  0x19   :  { %537 = shalt.err (!%p534_p10)
}
  0x1a   :  { %s538_s16 = scalar_lea.vmem %s637_s21, 256  ;;  %p543_p12 = scmp.lt.s32.totalorder %s637_s21, %s637_s21 }
  0x1b   :  { %p539_p11 = scmp.ne.s32.totalorder %s637_s21, %s538_s16  ;;  %p544_p13 = scmp.lt.s32.totalorder %s538_s16, %s538_s16 }
  0x1d   :  { %p545_p0 = por %p544_p13, %p543_p12 }
  0x1f   :  { %p546_p1 = pnand %p545_p0, %p539_p11 }
  0x21   :  { %549 = shalt.err (!%p546_p1)
}
  0x22   :  { %24 = dma.hbm_to_vmem [thread:$0]  %s715_s0, 256, %s637_s21, [#allocation3], %s602_s30, %s602_s30, %s603_s6  }
  0x23   :  { %s604_s18 = smov [#allocation7]   ;;  %s550_s23 = scalar_lea.hbm %s718_s3, 2048 }
  0x24   :  { %s44_s19 = sshll.u32 %s604_s18, 4  ;;  %p551_p2 = scmp.ne.s32.totalorder %s718_s3, %s550_s23  ;;  %s45_s19 = int_to_ptr.vmem [resolvable:$true] %s44_s19 }
  0x25   :  { %p554_p3 = scmp.lt.u32.totalorder %s550_s23, %s718_s3 }
  0x27   :  { %p556_p4 = pnand %p554_p3, %p551_p2 }
  0x29   :  { %559 = shalt.err (!%p556_p4)
}
  0x2a   :  { %s560_s28 = scalar_lea.vmem %s45_s19, 2048  ;;  %p565_p6 = scmp.lt.s32.totalorder %s45_s19, %s45_s19 }
  0x2b   :  { %p561_p5 = scmp.ne.s32.totalorder %s45_s19, %s560_s28  ;;  %p566_p7 = scmp.lt.s32.totalorder %s560_s28, %s560_s28 }
  0x2d   :  { %p567_p8 = por %p566_p7, %p565_p6 }
  0x2f   :  { %p568_p9 = pnand %p567_p8, %p561_p5 }
  0x31   :  { %571 = shalt.err (!%p568_p9)
}
  0x32   :  { %50 = dma.hbm_to_vmem [thread:$0]  %s718_s3, 2048, %s45_s19, [#allocation6], %s602_s30, %s602_s30, %s603_s6  }
  0x33   :  { %594 = dma.done.wait [#allocation3], 256  }
  0x34   :  { %595 = vsyncadd [#allocation3], 4294967040 }
  0x35   :  { %596 = dma.done.wait [#allocation6], 4096  }
  0x36   :  { %597 = vsyncadd [#allocation6], 4294963200  ;;  %v180_v0 = vld [vmem:[#allocation7] sm:$0xff]  ;;  %v181_v1 = vld [vmem:[#allocation7 + $0x8] sm:$0xff]  ;;  %s605_s7 = smov 64   ;;  %vm288_vm0 = vcmask 523264  }
  0x37   :  { %v182_v2 = vld [vmem:[#allocation7 + $0x10] sm:$0xff]  ;;  %v459_v3 = vpack.c.bf16 %v181_v1, %v180_v0  ;;  %v183_v4 = vld [vmem:[#allocation7 + $0x18] sm:$0xff]  ;;  %v184_v6 = vld [vmem:[#allocation7 + $0x20] sm:$0xff] }
  0x38   :  { %v463_v5 = vpack.c.bf16 %v183_v4, %v182_v2  ;;  %v185_v7 = vld [vmem:[#allocation7 + $0x28] sm:$0xff]  ;;  %v186_v9 = vld [vmem:[#allocation7 + $0x30] sm:$0xff]  ;;  %v187_v10 = vld [vmem:[#allocation7 + $0x38] sm:$0xff] }
  0x39   :  { %460 = vmatprep.subr.bf16.mxu1 %v459_v3  ;;  %v467_v8 = vpack.c.bf16 %v185_v7, %v184_v6  ;;  %v689_v11 = vld [vmem:[#allocation2] sm:$0xff]  ;;  %v64_v12 = vld [vmem:[#allocation5] sm:$0xff]  ;;  %v65_v13 = vld [vmem:[#allocation5 + $0x8] sm:$0xff]  ;;  %v471_v20 = vpack.c.bf16 %v187_v10, %v186_v9 }
  0x3a   :  { %462 = vmatpush3.bf16.msra.mxu1 %v459_v3  ;;  %424 = vmatprep.mubr.f32.mxu1 %v689_v11  ;;  %v66_v14 = vld [vmem:[#allocation5 + $0x10] sm:$0xff]  ;;  %v427_v15 = vpack.c.bf16 %v65_v13, %v64_v12  ;;  %v67_v16 = vld [vmem:[#allocation5 + $0x18] sm:$0xff]  ;;  %v68_v18 = vld [vmem:[#allocation5 + $0x20] sm:$0xff] }
  0x3b   :  { %464 = vmatprep.subr.bf16.mxu1 %v463_v5  ;;  %389 = vmatprep.mubr.f32.mxu0 %v689_v11  ;;  %v431_v17 = vpack.c.bf16 %v67_v16, %v66_v14  ;;  %v69_v19 = vld [vmem:[#allocation5 + $0x28] sm:$0xff]  ;;  %v188_v21 = vld [vmem:[#allocation7 + $0x40] sm:$0xff]  ;;  %v70_v24 = vld [vmem:[#allocation5 + $0x30] sm:$0xff] }
  0x3c   :  { %428 = vmatprep.subr.bf16.mxu0 %v427_v15  ;;  %v189_v22 = vld [vmem:[#allocation7 + $0x48] sm:$0xff]  ;;  %v435_v23 = vpack.c.bf16 %v69_v19, %v68_v18  ;;  %v71_v25 = vld [vmem:[#allocation5 + $0x38] sm:$0xff]  ;;  %v190_v27 = vld [vmem:[#allocation7 + $0x50] sm:$0xff] }
  0x3d   :  { %430 = vmatpush3.bf16.msra.mxu0 %v427_v15  ;;  %v475_v26 = vpack.c.bf16 %v189_v22, %v188_v21  ;;  %v191_v28 = vld [vmem:[#allocation7 + $0x58] sm:$0xff]  ;;  %v439_v29 = vpack.c.bf16 %v71_v25, %v70_v24  ;;  %v72_v30 = vld [vmem:[#allocation5 + $0x40] sm:$0xff]  ;;  %v73_v31 = vld [vmem:[#allocation5 + $0x48] sm:$0xff] }
  0x3e   :  { %466 = vmatpush3.bf16.msra.mxu1 %v463_v5  ;;  %432 = vmatprep.subr.bf16.mxu0 %v431_v17  ;;  %v479_v32 = vpack.c.bf16 %v191_v28, %v190_v27  ;;  %v192_v33 = vld [vmem:[#allocation7 + $0x60] sm:$0xff]  ;;  %v193_v34 = vld [vmem:[#allocation7 + $0x68] sm:$0xff]  ;;  %v443_v35 = vpack.c.bf16 %v73_v31, %v72_v30  ;;  %v74_v36 = vld [vmem:[#allocation5 + $0x50] sm:$0xff] }
  0x3f   :  { %468 = vmatprep.subr.bf16.mxu1 %v467_v8  ;;  %v75_v37 = vld [vmem:[#allocation5 + $0x58] sm:$0xff]  ;;  %v483_v38 = vpack.c.bf16 %v193_v34, %v192_v33  ;;  %v194_v39 = vld [vmem:[#allocation7 + $0x70] sm:$0xff]  ;;  %v76_v42 = vld [vmem:[#allocation5 + $0x60] sm:$0xff] }
  0x40   :  { %v195_v40 = vld [vmem:[#allocation7 + $0x78] sm:$0xff]  ;;  %v447_v41 = vpack.c.bf16 %v75_v37, %v74_v36  ;;  %v77_v43 = vld [vmem:[#allocation5 + $0x68] sm:$0xff]  ;;  %v78_v46 = vld [vmem:[#allocation5 + $0x70] sm:$0xff] }
  0x41   :  { %434 = vmatpush3.bf16.msra.mxu0 %v431_v17  ;;  %v487_v44 = vpack.c.bf16 %v195_v40, %v194_v39  ;;  %v451_v45 = vpack.c.bf16 %v77_v43, %v76_v42  ;;  %v79_v47 = vld [vmem:[#allocation5 + $0x78] sm:$0xff]  ;;  %v320_v50 = vld [vmem:[%s719_s4] ss:$0 sm:$0xff] }
  0x42   :  { %470 = vmatpush3.bf16.msra.mxu1 %v467_v8  ;;  %436 = vmatprep.subr.bf16.mxu0 %v435_v23  ;;  %v455_v48 = vpack.c.bf16 %v79_v47, %v78_v46  ;;  %v63_v49 = vld [vmem:[#allocation2 + $0x8] sm:$0xff]  ;;  %v319_v63 = vld [vmem:[%s717_s2] ss:$0 sm:$0xff]  ;;  %s606_s2 = smov [#allocation8]  }
  0x43   :  { %472 = vmatprep.subr.bf16.mxu1 %v471_v20  ;;  %s306_s9 = sshll.u32 %s606_s2, 4  ;;  %s307_s9 = int_to_ptr.vmem [resolvable:$true] %s306_s9 }
  0x44   :  { %s572_s10 = scalar_lea.vmem %s307_s9, 256  ;;  %p577_p11 = scmp.lt.s32.totalorder %s307_s9, %s307_s9 }
  0x45   :  { %438 = vmatpush3.bf16.msra.mxu0 %v435_v23  ;;  %p573_p10 = scmp.ne.s32.totalorder %s307_s9, %s572_s10  ;;  %p578_p12 = scmp.lt.s32.totalorder %s572_s10, %s572_s10 }
  0x46   :  { %474 = vmatpush3.bf16.msra.mxu1 %v471_v20  ;;  %440 = vmatprep.subr.bf16.mxu0 %v439_v29 }
  0x47   :  { %476 = vmatprep.subr.bf16.mxu1 %v475_v26  ;;  %p579_p13 = por %p578_p12, %p577_p11 }
  0x49   :  { %442 = vmatpush3.bf16.msra.mxu0 %v439_v29  ;;  %p580_p0 = pnand %p579_p13, %p573_p10 }
  0x4a   :  { %478 = vmatpush3.bf16.msra.mxu1 %v475_v26  ;;  %444 = vmatprep.subr.bf16.mxu0 %v443_v35 }
  0x4b   :  { %480 = vmatprep.subr.bf16.mxu1 %v479_v32 }
  0x4d   :  { %446 = vmatpush3.bf16.msra.mxu0 %v443_v35 }
  0x4e   :  { %482 = vmatpush3.bf16.msra.mxu1 %v479_v32  ;;  %448 = vmatprep.subr.bf16.mxu0 %v447_v41 }
  0x4f   :  { %484 = vmatprep.subr.bf16.mxu1 %v483_v38 }
  0x51   :  { %450 = vmatpush3.bf16.msra.mxu0 %v447_v41 }
  0x52   :  { %486 = vmatpush3.bf16.msra.mxu1 %v483_v38  ;;  %452 = vmatprep.subr.bf16.mxu0 %v451_v45 }
  0x53   :  { %488 = vmatprep.subr.bf16.mxu1 %v487_v44 }
  0x55   :  { %454 = vmatpush3.bf16.msra.mxu0 %v451_v45 }
  0x56   :  { %490 = vmatpush3.bf16.msra.mxu1 %v487_v44  ;;  %456 = vmatprep.subr.bf16.mxu0 %v455_v48 }
  0x59   :  { %425 = vmatmul.mubr.f32.vlgmr.msra.gmra.mrb[0].mxu1 %v63_v49  ;;  %458 = vmatpush3.bf16.msra.mxu0 %v455_v48 }
  0x5c   :  { %390 = vmatmul.mubr.f32.vlgmr.msra.gmra.mrb[0].mxu0 %v63_v49 }
 0x12c   :  { %v426_v51 = vpop.f32.mrb[0].mxu1 }
 0x12d   :  { %v269_v52 = vpop.f32.mrb[1].mxu1  ;;  %v275_v54 = vadd.f32 %v426_v51, %v320_v50 }
 0x12e   :  { %v270_v53 = vadd.f32 %v320_v50, %v269_v52 }
 0x12f   :  { %v391_v55 = vpop.f32.mrb[0].mxu0 }
 0x130   :  { %280 = vrot.lane.b32.xlu0 %v270_v53, %s605_s7  ;;  %v153_v56 = vpop.f32.mrb[1].mxu0  ;;  %v159_v1 = vadd.f32 %v391_v55, %v319_v63 }
 0x131   :  { %v154_v0 = vadd.f32 %v319_v63, %v153_v56 }
 0x132   :  { %v165_v3 = vand.u32 2147483647, %v159_v1  ;;  %v163_v17 = vmax.f32 %v159_v1, 0.0 }
 0x133   :  { %v164_v2 = vand.u32 2147483647, %v154_v0  ;;  %v162_v14 = vmax.f32 %v154_v0, 0.0 }
 0x134   :  { %282 = vrot.lane.b32.xlu0 %v275_v54, %s605_s7  ;;  %v167_v5 = vsub.f32 0.0, %v165_v3 }
 0x135   :  { %v166_v4 = vsub.f32 0.0, %v164_v2 }
 0x136   :  { %v170_v7 = vmul.f32 1.442695, %v167_v5 }
 0x137   :  { %v168_v6 = vmul.f32 1.442695, %v166_v4 }
 0x139   :  { %498 = vpow2.f32 %v168_v6 }
 0x13a   :  { %500 = vpow2.f32 %v170_v7 }
 0x143   :  { %v499_v8 = vpop.eup %498 }
 0x144   :  { %v172_v9 = vadd.f32 1.0, %v499_v8  ;;  %v501_v10 = vpop.eup %500 }
 0x145   :  { %v173_v12 = vadd.f32 1.0, %v501_v10 }
 0x146   :  { %502 = vlog2.f32 %v172_v9 }
 0x147   :  { %504 = vlog2.f32 %v173_v12 }
 0x150   :  { %v503_v13 = vpop.eup %502 }
 0x151   :  { %v175_v15 = vmul.f32 0.6931472, %v503_v13  ;;  %v505_v16 = vpop.eup %504 }
 0x152   :  { %v177_v19 = vmul.f32 0.6931472, %v505_v16 }
 0x153   :  { %v178_v18 = vadd.f32 %v175_v15, %v162_v14 }
 0x154   :  { %v179_v21 = vadd.f32 %v177_v19, %v163_v17 }
 0x155   :  { %v295_v20 = vmul.f32 %v178_v18, %v689_v11 }
 0x156   :  { %v296_v24 = vmul.f32 %v179_v21, %v63_v49 }
 0x1a2   :  { %v281_v57 = vpop.permute.xlu0 %280 }
 0x1a3   :  { %v286_v58 = vmul.f32 %v281_v57, %v270_v53 }
 0x1a5   :  { %v289_v59 = vsel %vm288_vm0, %v286_v58, 0.0 }
 0x1a6   :  { %290 = vadd.xlane.f32.xlu1 %v289_v59  ;;  %v283_v60 = vpop.permute.xlu0 %282 }
 0x1a7   :  { %v287_v61 = vmul.f32 %v283_v60, %v275_v54 }
 0x1a9   :  { %v292_v62 = vsel %vm288_vm0, %v287_v61, 0.0 }
 0x1aa   :  { %293 = vadd.xlane.f32.xlu1 %v292_v62 }
 0x233   :  { %v291_v22 = vpop.xlane.xlu1 %290 }
 0x234   :  { %v297_v23 = vmul.f32 %v295_v20, %v291_v22 }
 0x236   :  { %299 = vst [vmem:[#allocation8] sm:$0xff] %v297_v23 }
 0x237   :  { %v294_v25 = vpop.xlane.xlu1 %293 }
 0x238   :  { %v298_v26 = vmul.f32 %v296_v24, %v294_v25 }
 0x23a   :  { %300 = vst [vmem:[#allocation8 + $0x8] sm:$0xff] %v298_v26 }
 0x23b   :  { %583 = shalt.err (!%p580_p0)
}
 0x23c   :  { %s584_s13 = scalar_lea.hbm %s720_s5, 256 }
 0x23d   :  { %p585_p1 = scmp.ne.s32.totalorder %s720_s5, %s584_s13  ;;  %p588_p2 = scmp.lt.u32.totalorder %s584_s13, %s720_s5 }
 0x23f   :  { %p590_p3 = pnand %p588_p2, %p585_p1 }
 0x241   :  { %593 = shalt.err (!%p590_p3)
}
 0x242   :  { %312 = dma.vmem_to_hbm [thread:$0]  %s307_s9, 256, %s720_s5, [#allocation4], %s602_s30, %s602_s30, %s603_s6  }
 0x243   :  { %598 = dma.done.wait [#allocation4], 256  }
 0x244   :  { %599 = vsyncadd [#allocation4], 4294967040 }
 0x245   :  { %316 = vsyncpa [#allocation3], 1 }
 0x246   :  { %317 = vsyncpa [#allocation6], 1 }
 0x247   :  { %318 = vsyncpa [#allocation4], 1 }

</bundles_post_ra>
